<compile_context>
chip_gen: v6e
topology: v6e:2x2x1
jax: 0.10.0
libtpu: 0.0.40
codegen_flags: <defaults>
</compile_context>

<pallas_src>
import jax
import jax.numpy as jnp
import numpy as np
from jax import lax
from jax.experimental import pallas as pl
from jax.experimental.pallas import tpu as pltpu


# ------------------------------- Pallas kernel --------------------------------


def head_kernel(xq_ref, x_ref, w_ref, o_ref):
    """One grid step: queries for one (batch, q-tile); keys/values from the full sequence.

    xq_ref: (1, block_q, C)   rows of x belonging to this query tile
    x_ref : (1, T, C)         full sequence (source for K / V)
    w_ref : (C, 3*H) bf16     fused QKV weight, resident across grid steps
    o_ref : (1, block_q, H)
    """
    qi = pl.program_id(1)

    block_q = xq_ref.shape[1]
    seq_len = x_ref.shape[1]
    head_size = w_ref.shape[1] // 3
    scale = 1.0 / (head_size ** 0.5)

    w = w_ref[...]                                   # (C, 3H) bf16

    # ---- fused QKV projection: bf16 inputs -> MXU, f32 accumulation ----
    xq = xq_ref[0].astype(jnp.bfloat16)              # (block_q, C)
    qkv_q = jnp.dot(xq, w, preferred_element_type=jnp.float32)          # (block_q, 3H)
    q = qkv_q[:, :head_size]                         # (block_q, H) f32

    xf = x_ref[0].astype(jnp.bfloat16)               # (T, C)
    kv = jnp.dot(xf, w[:, head_size:], preferred_element_type=jnp.float32)  # (T, 2H)
    k = kv[:, :head_size]
    v = kv[:, head_size:]

    # ---- causal scaled-dot-product attention for this q tile (f32 softmax) ----
    s = lax.dot_general(q.astype(jnp.bfloat16), k.astype(jnp.bfloat16),
                        (((1,), (1,)), ((), ())),
                        preferred_element_type=jnp.float32) * scale     # (block_q, T)

    q_pos = qi * block_q + lax.broadcasted_iota(jnp.int32, (block_q, seq_len), 0)
    k_pos = lax.broadcasted_iota(jnp.int32, (block_q, seq_len), 1)
    s = jnp.where(k_pos <= q_pos, s, -1e30)

    s = s - jnp.max(s, axis=-1, keepdims=True)
    p = jnp.exp(s)
    inv_l = pl.reciprocal(jnp.sum(p, axis=-1, keepdims=True), approx=True)

    out = jnp.dot(p.astype(jnp.bfloat16), v.astype(jnp.bfloat16),
                  preferred_element_type=jnp.float32) * inv_l           # (block_q, H)

    o_ref[0] = out.astype(o_ref.dtype)


# --------------------------------- wrapper -------------------------------------


def head_attention(x, w_qkv, *, head_size, block_q=None):
    """x: (B, T, C) float32.  w_qkv: (C, 3*head_size).  Returns (B, T, head_size) f32."""
    B, T, C = x.shape
    assert w_qkv.shape == (C, 3 * head_size)

    if block_q is None:
        block_q = 128 if T % 128 == 0 else T          # (8,128)-legal q tile
    assert T % block_q == 0
    n_q = T // block_q

    w_bf16 = w_qkv.astype(jnp.bfloat16)               # narrow at the MXU boundary only

    return pl.pallas_call(
        head_kernel,
        out_shape=jax.ShapeDtypeStruct((B, T, head_size), jnp.float32),
        grid_spec=pltpu.PrefetchScalarGridSpec(
            num_scalar_prefetch=0,
            grid=(B, n_q),
            in_specs=[
                pl.BlockSpec((1, block_q, C), lambda b, qi: (b, qi, 0)),      # q-tile rows
                pl.BlockSpec((1, T, C),       lambda b, qi: (b, 0, 0)),       # full seq (K/V)
                pl.BlockSpec((C, 3 * head_size), lambda b, qi: (0, 0)),       # W_qkv resident
            ],
            out_specs=pl.BlockSpec((1, block_q, head_size), lambda b, qi: (b, qi, 0)),
        ),
        compiler_params=pltpu.CompilerParams(
            dimension_semantics=("parallel", "parallel")),
    )(x, x, w_bf16)


# ---------------------------- reference (plain JAX, f32) ------------------------


def reference_head(x, w_qkv, *, head_size):
    qkv = x @ w_qkv
    q, k, v = jnp.split(qkv, 3, axis=-1)
    T = x.shape[1]
    s = jnp.einsum("btd,bsd->bts", q, k) / (head_size ** 0.5)
    causal = jnp.tril(jnp.ones((T, T), dtype=bool))
    s = jnp.where(causal, s, -jnp.inf)
    p = jax.nn.softmax(s, axis=-1)
    return jnp.einsum("bts,bsd->btd", p, v)


# ------------------------------------- main -------------------------------------


if __name__ == "__main__":
    # Head(n_embd=32, head_size=16, dropout=0.0) applied to x of shape (B, T, n_embd).
    B, T, C, head_size = 2, 8, 32, 16
    key = jax.random.PRNGKey(0)
    kx, kw = jax.random.split(key)

    x = jax.random.normal(kx, (B, T, C), jnp.float32)
    w_qkv = 0.02 * jax.random.normal(kw, (C, 3 * head_size), jnp.float32)

    out = head_attention(x, w_qkv, head_size=head_size)
    out = jax.block_until_ready(out)

    ref = reference_head(x, w_qkv, head_size=head_size)
    # bf16 MXU inputs + approximate reciprocal -> compare against the pure-f32
    # reference with a correspondingly loosened tolerance.
    np.testing.assert_allclose(np.asarray(out), np.asarray(ref), rtol=2e-2, atol=2e-3)

    print("KERNEL_OK")
</pallas_src>

<mosaic_0001>
module attributes {stable_mosaic.version = 11 : i64} {
  func.func @head_kernel(%arg0: i32, %arg1: i32, %arg2: memref<1x8x32xf32, #tpu.memory_space<vmem>>, %arg3: memref<1x8x32xf32, #tpu.memory_space<vmem>>, %arg4: memref<32x48xbf16, #tpu.memory_space<vmem>>, %arg5: memref<1x8x16xf32, #tpu.memory_space<vmem>>) attributes {dimension_semantics = [#tpu.dimension_semantics<parallel>, #tpu.dimension_semantics<parallel>], iteration_bounds = array<i64: 2, 1>, scalar_prefetch = 0 : i64, scratch_operands = 0 : i64, tpu.core_type = #tpu.core_type<tc>, window_params = [{transform_indices = @transform_0, window_bounds = array<i64: 1, 8, 32>}, {transform_indices = @transform_1, window_bounds = array<i64: 1, 8, 32>}, {pipeline_mode = #tpu.pipeline_mode<synchronous>, transform_indices = @transform_2, window_bounds = array<i64: 32, 48>}, {transform_indices = @transform_3, window_bounds = array<i64: 1, 8, 16>}]} {
    %c0 = arith.constant 0 : index
    %c0_0 = arith.constant 0 : index
    %0 = vector.load %arg4[%c0, %c0_0] : memref<32x48xbf16, #tpu.memory_space<vmem>>, vector<32x48xbf16>
    %c0_1 = arith.constant 0 : index
    %c0_2 = arith.constant 0 : index
    %c0_3 = arith.constant 0 : index
    %1 = vector.load %arg2[%c0_1, %c0_2, %c0_3] : memref<1x8x32xf32, #tpu.memory_space<vmem>>, vector<1x8x32xf32>
    %2 = vector.shape_cast %1 : vector<1x8x32xf32> to vector<8x32xf32>
    %3 = arith.truncf %2 : vector<8x32xf32> to vector<8x32xbf16>
    %cst = arith.constant dense<0.000000e+00> : vector<8x48xf32>
    %4 = tpu.matmul %3, %0, %cst {dimension_numbers = #tpu.dot_dimension_numbers<[1], [0], [0], [1], [0, 0, 1, 1], [], []>} : vector<8x32xbf16>, vector<32x48xbf16>, vector<8x48xf32> -> vector<8x48xf32>
    %5 = vector.extract_strided_slice %4 {offsets = [0, 0], sizes = [8, 16], strides = [1, 1]} : vector<8x48xf32> to vector<8x16xf32>
    %c0_4 = arith.constant 0 : index
    %c0_5 = arith.constant 0 : index
    %c0_6 = arith.constant 0 : index
    %6 = vector.load %arg3[%c0_4, %c0_5, %c0_6] : memref<1x8x32xf32, #tpu.memory_space<vmem>>, vector<1x8x32xf32>
    %7 = vector.shape_cast %6 : vector<1x8x32xf32> to vector<8x32xf32>
    %8 = arith.truncf %7 : vector<8x32xf32> to vector<8x32xbf16>
    %9 = vector.extract_strided_slice %0 {offsets = [0, 16], sizes = [32, 32], strides = [1, 1]} : vector<32x48xbf16> to vector<32x32xbf16>
    %cst_7 = arith.constant dense<0.000000e+00> : vector<8x32xf32>
    %10 = tpu.matmul %8, %9, %cst_7 {dimension_numbers = #tpu.dot_dimension_numbers<[1], [0], [0], [1], [0, 0, 1, 1], [], []>} : vector<8x32xbf16>, vector<32x32xbf16>, vector<8x32xf32> -> vector<8x32xf32>
    %11 = vector.extract_strided_slice %10 {offsets = [0, 0], sizes = [8, 16], strides = [1, 1]} : vector<8x32xf32> to vector<8x16xf32>
    %12 = vector.extract_strided_slice %10 {offsets = [0, 16], sizes = [8, 16], strides = [1, 1]} : vector<8x32xf32> to vector<8x16xf32>
    %13 = arith.truncf %5 : vector<8x16xf32> to vector<8x16xbf16>
    %14 = arith.truncf %11 : vector<8x16xf32> to vector<8x16xbf16>
    %cst_8 = arith.constant dense<0.000000e+00> : vector<8x8xf32>
    %15 = tpu.matmul %13, %14, %cst_8 {dimension_numbers = #tpu.dot_dimension_numbers<[1], [1], [0], [0], [0, 0, 1, 0], [], []>} : vector<8x16xbf16>, vector<8x16xbf16>, vector<8x8xf32> -> vector<8x8xf32>
    %cst_9 = arith.constant 2.500000e-01 : f32
    %16 = vector.broadcast %cst_9 : f32 to vector<8x8xf32>
    %17 = arith.mulf %15, %16 : vector<8x8xf32>
    %c8_i32 = arith.constant 8 : i32
    %18 = arith.muli %arg1, %c8_i32 : i32
    %19 = tpu.iota {dimensions = array<i32: 0>} : vector<8x8xi32>
    %20 = vector.broadcast %18 : i32 to vector<8x8xi32>
    %21 = arith.addi %20, %19 : vector<8x8xi32>
    %22 = tpu.iota {dimensions = array<i32: 1>} : vector<8x8xi32>
    %23 = arith.cmpi sle, %22, %21 : vector<8x8xi32>
    %cst_10 = arith.constant -1.000000e+30 : f32
    %24 = vector.broadcast %cst_10 : f32 to vector<8x8xf32>
    %25 = arith.select %23, %17, %24 : vector<8x8xi1>, vector<8x8xf32>
    %cst_11 = arith.constant dense<0xFF800000> : vector<8xf32>
    %26 = vector.multi_reduction <maximumf>, %25, %cst_11 [1] : vector<8x8xf32> to vector<8xf32>
    %27 = vector.shape_cast %26 : vector<8xf32> to vector<8x1xf32>
    %28 = vector.broadcast %27 : vector<8x1xf32> to vector<8x8xf32>
    %29 = arith.subf %25, %28 : vector<8x8xf32>
    %30 = math.exp %29 : vector<8x8xf32>
    %cst_12 = arith.constant dense<0.000000e+00> : vector<8xf32>
    %31 = vector.multi_reduction <add>, %30, %cst_12 [1] : vector<8x8xf32> to vector<8xf32>
    %32 = vector.shape_cast %31 : vector<8xf32> to vector<8x1xf32>
    %33 = tpu.reciprocal %32 {approx = true} : vector<8x1xf32> -> vector<8x1xf32>
    %34 = arith.truncf %30 : vector<8x8xf32> to vector<8x8xbf16>
    %35 = arith.truncf %12 : vector<8x16xf32> to vector<8x16xbf16>
    %cst_13 = arith.constant dense<0.000000e+00> : vector<8x16xf32>
    %36 = tpu.matmul %34, %35, %cst_13 {dimension_numbers = #tpu.dot_dimension_numbers<[1], [0], [0], [1], [0, 0, 1, 1], [], []>} : vector<8x8xbf16>, vector<8x16xbf16>, vector<8x16xf32> -> vector<8x16xf32>
    %37 = vector.broadcast %33 : vector<8x1xf32> to vector<8x16xf32>
    %38 = arith.mulf %36, %37 : vector<8x16xf32>
    %c0_14 = arith.constant 0 : index
    %c0_15 = arith.constant 0 : index
    %c0_16 = arith.constant 0 : index
    %39 = vector.load %arg5[%c0_14, %c0_15, %c0_16] : memref<1x8x16xf32, #tpu.memory_space<vmem>>, vector<1x8x16xf32>
    %40 = vector.shape_cast %39 : vector<1x8x16xf32> to vector<8x16xf32>
    %41 = vector.shape_cast %38 : vector<8x16xf32> to vector<1x8x16xf32>
    tpu.vector_store %arg5[%c0_14, %c0_15, %c0_16], %41 {strides = array<i32>} : memref<1x8x16xf32, #tpu.memory_space<vmem>>, vector<1x8x16xf32>,
    return
  }
  func.func @transform_0(%arg0: i32, %arg1: i32) -> (i32, i32, i32) {
    %c0_i32 = arith.constant 0 : i32
    %c0_i32_0 = arith.constant 0 : i32
    return %arg0, %arg1, %c0_i32 : i32, i32, i32
  }
  func.func @transform_1(%arg0: i32, %arg1: i32) -> (i32, i32, i32) {
    %c0_i32 = arith.constant 0 : i32
    %c0_i32_0 = arith.constant 0 : i32
    %c0_i32_1 = arith.constant 0 : i32
    return %arg0, %c0_i32, %c0_i32_0 : i32, i32, i32
  }
  func.func @transform_2(%arg0: i32, %arg1: i32) -> (i32, i32) {
    %c0_i32 = arith.constant 0 : i32
    %c0_i32_0 = arith.constant 0 : i32
    %c0_i32_1 = arith.constant 0 : i32
    return %c0_i32, %c0_i32_0 : i32, i32
  }
  func.func @transform_3(%arg0: i32, %arg1: i32) -> (i32, i32, i32) {
    %c0_i32 = arith.constant 0 : i32
    %c0_i32_0 = arith.constant 0 : i32
    return %arg0, %arg1, %c0_i32 : i32, i32, i32
  }
}

</mosaic_0001>

<bundles_post_ra>
// kernel: tpu_custom_call.1
= control target key start
LH: loop header
LB: loop body
LE: loop exit
PB: predicated region body
PF: predicated region fallthrough
CT: control target
= control target key end

     0   :  { %s1183_s0 = inlined_call_operand.hbm [shape: f32[2,8,32], index: 0, kind: input, shape index: {}]   ;;  %s1184_s1 = inlined_call_operand.hbm [shape: f32[2,8,32], index: 1, kind: input, shape index: {}]   ;;  %s1185_s2 = inlined_call_operand.hbm [shape: bf16[32,48], index: 2, kind: input, shape index: {}]   ;;  %s1186_s3 = inlined_call_operand.hbm [shape: f32[2,8,16], index: 3, kind: output, shape index: {}]  }
   0x1   :  { %1187 = sst [smem:[#allocation13_spill]] %s1185_s2 }
   0x2   :  { %8 = vsyncpa [#allocation3], 0 }
   0x3   :  { %10 = vsyncpa [#allocation3 + $0x1], 0 }
   0x4   :  { %11 = vsyncpa [#allocation6], 0 }
   0x5   :  { %13 = vsyncpa [#allocation6 + $0x1], 0 }
   0x6   :  { %14 = vsyncpa [#allocation4], 0 }
   0x7   :  { %16 = vsyncpa [#allocation4 + $0x1], 0  ;;  %s970_s12 = smov 0   ;;  %s972_s13 = smov 0  }
   0x8   :  { %s974_s14 = smov 0   ;;  %s976_s15 = smov 0  }
   0x9   :  { %s978_s16 = smov 0   ;;  %s980_s17 = smov 0  }
   0xa LB: > { %s1001_s18 = sadd.s32 4294967295, %s939_s17   ;;  %s619_s19 = sadd.s32 4294967294, %s939_s17   ;;  %s939_s17 = sphi %s980_s17, %s22_s17   ;;  %s935_s16 = sphi %s978_s16, %s1203_s16   ;;  %s931_s15 = sphi %s976_s15, %s1202_s15   ;;  %s927_s14 = sphi %s974_s14, %s1201_s14   ;;  %s923_s13 = sphi %s972_s13, %s1200_s13   ;;  %s919_s12 = sphi %s970_s12, %s1199_s12  }
   0xb   : > { %p56_p0 = scmp.ne.s32.totalorder %s923_s13, %s919_s12  ;;  %p57_p1 = scmp.eq.s32.totalorder %s1001_s18, 0 }
   0xc   : > { %p135_p3 = scmp.eq.s32.totalorder %s619_s19, 1  ;;  %p620_p5 = scmp.ge.s32.totalorder %s939_s17, 1 }
   0xd   : > { %p1010_p4 = por %p57_p1, %p56_p0  ;;  %p142_p7 = scmp.lt.s32.totalorder %s939_s17, 3 }
   0xe   : > { %p1015_p6 = por %p135_p3, %p56_p0  ;;  %s941_s23 = smov [#allocation7]  }
   0xf   : > { %p1020_p8 = pnand %p620_p5, %p142_p7  ;;  %s154_s24 = sshll.u32 %s941_s23, 4  ;;  %s155_s24 = int_to_ptr.vmem [resolvable:$true] %s154_s24 }
  0x10   : > { %s1189_s21 = scalar_select %p1015_p6, 1, 0 }
  0x11   : > { %p690_p9 = pneg %p1020_p8  ;;  %s34_s26 = sadd.s32 1, %s935_s16 }
  0x12   : > { %s780_s27 = scalar_lea.vmem %s155_s24, 256  ;;  %p788_p5 = scmp.lt.s32.totalorder %s155_s24, %s155_s24 }
  0x13   : > { %p1029_p11 = pnand %p690_p9, %p57_p1  ;;  %p781_p13 = scmp.ne.s32.totalorder %s155_s24, %s780_s27 }
  0x14   : > { %p789_p7 = scmp.lt.s32.totalorder %s780_s27, %s780_s27 }
  0x15   : > { %p771_p12 = pneg %p1029_p11 }
  0x16   : > { %p790_p2 = por %p789_p7, %p788_p5 }
  0x17   : > { %p783_p0 = pnand %p781_p13, %p771_p12 }
  0x19   : > { %p784_p3 = pneg %p783_p0 }
  0x1b   : > { %p791_p6 = pnand %p790_p2, %p784_p3 }
  0x1d   : > { %794 = shalt.err (!%p791_p6)
}
  0x1e   : > { %s942_s28 = smov 64   ;;  %s943_s29 = smov 4  }
  0x1f   : > { %s1192_s2 = sld [smem:[#allocation13_spill]]  ;;  %p36_p2 = scmp.ge.s32.totalorder %s34_s26, 2 }
  0x20   : > { %s43_s5 = sadd.s32 1, %s927_s14  ;;  %p50_p6 = scmp.ne.s32.totalorder %s927_s14, %s923_s13 }
  0x21   : > { %p51_p9 = scmp.eq.s32.totalorder %s939_s17, 0  ;;  %s1205_s26 = smov (%p36_p2, %s34_s26), 0 }
  0x22   : > { %p1194_p13 = scmp.eq.s32.totalorder %s1001_s18, 1  ;;  %s38_s8 = ssub.s32 %s935_s16, %s1205_s26 }
  0x23   : > { %p1047_p12 = por %p51_p9, %p50_p6  ;;  %p41_p3 = scmp.eq.s32.totalorder %s38_s8, 0 }
  0x24   : > { %p1053_p0 = por %p1194_p13, %p50_p6  ;;  %s168_s9 = sand.u32 1, %s927_s14  }
  0x25   : > { %693 = dma.hbm_to_vmem [thread:$0]  (!%p1029_p11), %s1192_s2, 256, %s155_s24, [#allocation6], %s942_s28, %s942_s28, %s943_s29  }
  0x26   : > { %p706_p11 = scmp.lt.s32.totalorder %s939_s17, 2  ;;  %s623_s10 = sshll.u32 %s168_s9, 3 }
  0x27   : > { %s1062_s11 = scalar_select %p41_p3, %s927_s14, %s43_s5  }
  0x28   : > { %s624_s19 = sshll.u32 %s935_s16, 7  ;;  %s172_s27 = scalar_lea.vmem [#allocation2], %s623_s10 }
  0x29   : > { %s178_s25 = scalar_lea.hbm %s1183_s0, %s624_s19  ;;  %s180_s28 = sshll.u32 %s172_s27, 4  ;;  %s181_s28 = int_to_ptr.vmem [resolvable:$true] %s180_s28 }
  0x2a   : > { %p1070_p5 = pnand %p706_p11, %p1047_p12  ;;  %s1077_s5 = scalar_lea.hbm %s1184_s1, %s624_s19 }
  0x2b   : > { %s187_s8 = sand.u32 1, %s939_s17   ;;  %s169_s2 = scalar_lea.sflag [#allocation3], %s168_s9 }
  0x2c   : > { %p797_p7 = pneg %p1070_p5  ;;  %s808_s23 = scalar_lea.vmem %s181_s28, 128 }
  0x2d   : > { %p809_p2 = scmp.ne.s32.totalorder %s181_s28, %s808_s23  ;;  %s944_s6 = smov [#allocation2]  }
  0x2e   : > { %s813_s24 = sshll.u32 %s944_s6, 4  ;;  %s814_s24 = int_to_ptr.vmem [resolvable:$false] %s813_s24 }
  0x2f   : > { %p811_p6 = pnand %p809_p2, %p797_p7  ;;  %s815_s27 = scalar_lea.vmem %s814_s24, 256 }
  0x30   : > { %p816_p12 = scmp.lt.s32.totalorder %s181_s28, %s814_s24  ;;  %p817_p13 = scmp.lt.s32.totalorder %s815_s27, %s808_s23 }
  0x31   : > { %p812_p9 = pneg %p811_p6 }
  0x32   : > { %p818_p11 = por %p817_p13, %p816_p12 }
  0x34   : > { %p819_p3 = pnand %p818_p11, %p812_p9 }
  0x36   : > { %822 = shalt.err (!%p819_p3)
}
  0x37   : > { %697 = dma.hbm_to_vmem [thread:$0]  (!%p1070_p5), %s178_s25, 128, %s181_s28, %s169_s2  }
  0x38   : > { %s191_s9 = scalar_lea.vmem [#allocation5], %s623_s10  ;;  %s188_s30 = scalar_lea.sflag [#allocation6], %s187_s8 }
  0x39   : > { %s198_s19 = sshll.u32 %s191_s9, 4  ;;  %s945_s6 = smov [#allocation5]   ;;  %s199_s19 = int_to_ptr.vmem [resolvable:$true] %s198_s19 }
  0x3a   : > { %s836_s4 = scalar_lea.vmem %s199_s19, 128  ;;  %s841_s24 = sshll.u32 %s945_s6, 4  ;;  %s842_s24 = int_to_ptr.vmem [resolvable:$false] %s841_s24 }
  0x3b   : > { %p837_p2 = scmp.ne.s32.totalorder %s199_s19, %s836_s4  ;;  %s843_s23 = scalar_lea.vmem %s842_s24, 256 }
  0x3c   : > { %p844_p9 = scmp.lt.s32.totalorder %s199_s19, %s842_s24  ;;  %p845_p12 = scmp.lt.s32.totalorder %s843_s23, %s836_s4 }
  0x3d   : > { %p839_p6 = pnand %p837_p2, %p797_p7 }
  0x3e   : > { %p846_p13 = por %p845_p12, %p844_p9 }
  0x3f   : > { %p840_p10 = pneg %p839_p6 }
  0x41   : > { %p847_p11 = pnand %p846_p13, %p840_p10 }
  0x43   : > { %850 = shalt.err (!%p847_p11)
}
  0x44   : > { %700 = dma.hbm_to_vmem [thread:$0]  (!%p1070_p5), %s1077_s5, 128, %s199_s19, %s188_s30  }
  0x45   : > { %207 = sbr.rel (%p1020_p8) target bundleno = 972 (0x3cc), region = 32  ;;  %s1096_s2 = sand.u32 (!%p1020_p8), 1, %s923_s13  }
  0x46   : > { %s1099_s10 = sshll.u32 (!%p1020_p8), %s1096_s2, 3  ;;  %s210_s25 = scalar_lea.sflag (!%p1020_p8), [#allocation3], %s1096_s2 }
  0x47   : > { %s213_s28 = scalar_lea.vmem (!%p1020_p8), [#allocation2], %s1099_s10 }
  0x4a   : > { %902 = dma.done.wait (%p1010_p4), %s210_s25, 128  }
  0x4b   : > { %904 = vsyncadd (%p1010_p4), %s210_s25, 4294967168  ;;  %s218_s22 = sand.u32 1, %s1001_s18   ;;  %s222_s5 = scalar_lea.vmem [#allocation5], %s1099_s10 }
  0x4c   : > { %s219_s29 = scalar_lea.sflag [#allocation6], %s218_s22 }
  0x4d   : > { %906 = dma.done.wait (%p1010_p4), %s219_s29, 128  }
  0x4e   : > { %908 = vsyncadd (%p1010_p4), %s219_s29, 4294967168 }
  0x4f   : > { %910 = dma.done.wait (%p57_p1), [#allocation6], 256  }
  0x50   : > { %912 = vsyncadd (%p57_p1), [#allocation6], 4294967040  ;;  %v946_v0 = vmov 0.0   ;;  %vm947_vm0 = vmmov 0   ;;  %v763_v1 = vld [vmem:[#allocation7 + $0x8] sm:$0xff]   ;;  %s948_s8 = smov 112   ;;  %v419_v20 = vlaneseq }
  0x51   : > { %660 = vmatprep.subr.bf16.mxu1 %v946_v0  ;;  %652 = vmatprep.subr.bf16.mxu0 %v946_v0  ;;  %v764_v2 = vld [vmem:[#allocation7] sm:$0xff]   ;;  %vm273_vm1 = vcmask 261120   ;;  %v317_v6 = vld [vmem:[%s222_s5] sm:$0xff]  ;;  %vm370_vm2 = vcmask 130048   ;;  %vm427_vm4 = vcmask 64512   ;;  %vm445_vm5 = vcmask 1043456  }
  0x52   : > { %664 = vmatprep.mubr.msk.bf16.mxu1 %vm947_vm0, %v946_v0  ;;  %656 = vmatprep.mubr.msk.bf16.mxu0 %vm947_vm0, %v946_v0  ;;  %v259_v3 = vld [vmem:[%s213_s28] sm:$0xff]  ;;  %v318_v8 = vpack.c.bf16 %v317_v6, %v317_v6  ;;  %v420_v21 = vshrl.u32 %v419_v20, 7  ;;  %v424_v22 = vand.u32 127, %v419_v20  ;;  %s639_s18 = sshll.u32 %s931_s15, 7  ;;  %s253_s20 = scalar_lea.vmem [#allocation8], %s1099_s10 }
  0x53   : > { %321 = vrot.lane.b32.xlu0 %v763_v1, %s948_s8  ;;  %653 = vmatpush3.bf16.msra.mxu0 %v763_v1  ;;  %v260_v4 = vpack.c.bf16 %v259_v3, %v259_v3  ;;  %s506_s27 = sshll.u32 %s253_s20, 4  ;;  %s1134_s30 = scalar_lea.hbm %s1186_s3, %s639_s18  ;;  %s1136_s27 = int_to_ptr.vmem [resolvable:$true] %s506_s27 }
  0x54   : > { %654 = vmatprep.subr.bf16.mxu0 %v946_v0  ;;  %vm425_vm3 = vcmp.le.s32.totalorder %v424_v22, %v420_v21  ;;  %s492_s15 = scalar_lea.sflag [#allocation4], %s1096_s2  ;;  %s851_s4 = scalar_lea.vmem %s1136_s27, 128 }
  0x55   : > { %p852_p1 = scmp.ne.s32.totalorder %s1136_s27, %s851_s4  ;;  %s949_s6 = smov [#allocation8]  }
  0x56   : > { %s855_s24 = sshll.u32 %s949_s6, 4  ;;  %s856_s24 = int_to_ptr.vmem [resolvable:$false] %s855_s24 }
  0x57   : > { %319 = vrot.lane.b32.xlu0 %v764_v2, %s948_s8  ;;  %655 = vmatpush3.bf16.msra.mxu0 %v764_v2  ;;  %p853_p4 = pnand %p852_p1, %p1053_p0  ;;  %s857_s23 = scalar_lea.vmem %s856_s24, 256 }
  0x58   : > { %668 = vmatprep.subr.bf16.mxu0 %v946_v0  ;;  %p858_p10 = scmp.lt.s32.totalorder %s1136_s27, %s856_s24  ;;  %p859_p5 = scmp.lt.s32.totalorder %s857_s23, %s851_s4 }
  0x59   : > { %p854_p8 = pneg %p853_p4 }
  0x5a   : > { %657 = vmatmul.mubr.msk.bf16.vlgmr.msra.gmra.mxu0 %vm273_vm1, %v260_v4  ;;  %p860_p7 = por %p859_p5, %p858_p10 }
  0x5b   : > { %670 = vmatprep.mubr.msk.bf16.mxu0 %vm947_vm0, %v946_v0 }
  0x5c   : > { %p861_p3 = pnand %p860_p7, %p854_p8 }
  0xc5   : > { %v322_v5 = vpop.permute.xlu0 %321 }
  0xc6   : > { %661 = vmatpush3.bf16.msra.mxu1 %v322_v5 }
  0xc7   : > { %662 = vmatprep.subr.bf16.mxu1 %v946_v0 }
  0xc9   : > { %v320_v7 = vpop.permute.xlu0 %319 }
  0xca   : > { %663 = vmatpush3.bf16.msra.mxu1 %v320_v7 }
  0xcb   : > { %674 = vmatprep.subr.bf16.mxu1 %v946_v0 }
  0xcd   : > { %665 = vmatmul.mubr.msk.bf16.vlgmr.msra.gmra.mxu1 %vm273_vm1, %v318_v8 }
  0xce   : > { %676 = vmatprep.mubr.msk.bf16.mxu1 %vm947_vm0, %v946_v0 }
 0x11a   : > { %v311_v9 = vpop.f32.mrf.mxu0 }
 0x11b   : > { %v368_v19 = vpack.c.bf16 %v311_v9, %v311_v9 }
 0x11c   : > { %v658_v10 = vpop.f32.mrf.mxu0 }
 0x11e   : > { %v314_v11 = vpop.f32.mrf.mxu0 }
 0x120   : > { %v659_v12 = vpop.f32.mrf.mxu0 }
 0x18d   : > { %v362_v13 = vpop.f32.mrf.mxu1 }
 0x18e   : > { %v369_v14 = vpack.c.bf16 %v362_v13, %v362_v13 }
 0x18f   : > { %v666_v15 = vpop.f32.mrf.mxu1 }
 0x190   : > { %v375_v16 = vsel %vm370_vm2, %v369_v14, 0 }
 0x191   : > { %v365_v17 = vpop.f32.mrf.mxu1  ;;  %669 = vmatpush3.bf16.xpose.msra.mxu0 %v375_v16 }
 0x193   : > { %v667_v18 = vpop.f32.mrf.mxu1 }
 0x198   : > { %671 = vmatmul.mubr.msk.bf16.vlgmr.msra.gmra.mxu0 %vm370_vm2, %v368_v19 }
 0x258   : > { %v411_v23 = vpop.f32.mrf.mxu0 }
 0x259   : > { %v417_v24 = vmul.f32 0.25, %v411_v23 }
 0x25a   : > { %v672_v25 = vpop.f32.mrf.mxu0 }
 0x25b   : > { %v426_v26 = vsel %vm425_vm3, %v417_v24, -1e+30 }
 0x25c   : > { %v414_v27 = vpop.f32.mrf.mxu0  ;;  %v428_v28 = vsel %vm427_vm4, %v426_v26, -inf }
 0x25d   : > { %429 = vmax.xlane.f32.xlu1 %v428_v28 }
 0x25e   : > { %v673_v29 = vpop.f32.mrf.mxu0 }
 0x26e   : > { %440 = vrot.lane.b32.xlu1 %v369_v14, %s948_s8 }
 0x2e6   : > { %v430_v30 = vpop.xlane.xlu1 %429 }
 0x2e7   : > { %v431_v31 = vsub.f32 %v426_v26, %v430_v30 }
 0x2e9   : > { %v432_v32 = vmul.f32 1.442695, %v431_v31 }
 0x2ea   : > { %v441_v33 = vpop.permute.xlu1 %440 }
 0x2eb   : > { %765 = vpow2.f32 %v432_v32  ;;  %v447_v34 = vsel %vm445_vm5, %v441_v33, 0 }
 0x2ec   : > { %675 = vmatpush3.bf16.msra.mxu1 %v447_v34 }
 0x2f8   : > { %v766_v35 = vpop.eup %765 }
 0x2f9   : > { %v434_v36 = vsel %vm427_vm4, %v766_v35, 0.0  ;;  %v438_v37 = vpack.c.bf16 %v766_v35, %v766_v35 }
 0x2fa   : > { %435 = vadd.xlane.f32.xlu0 %v434_v36 }
 0x2fb   : > { %677 = vmatmul.mubr.msk.bf16.vlgmr.msra.gmra.mxu1 %vm427_vm4, %v438_v37 }
 0x383   : > { %v436_v38 = vpop.xlane.xlu0 %435 }
 0x384   : > { %767 = vrcp.f32 %v436_v38 }
 0x391   : > { %v768_v39 = vpop.eup %767 }
 0x3bb   : > { %v483_v40 = vpop.f32.mrf.mxu1 }
 0x3bc   : > { %v489_v41 = vmul.f32 %v768_v39, %v483_v40 }
 0x3bd   : > { %v678_v42 = vpop.f32.mrf.mxu1 }
 0x3be   : > { %490 = vst.msk [vmem:[%s253_s20] sm:$0xff] %vm370_vm2, %v489_v41 }
 0x3bf   : > { %v486_v43 = vpop.f32.mrf.mxu1 }
 0x3c0   : > { %864 = shalt.err (!%p861_p3)
}
 0x3c1   : > { %s865_s10 = scalar_lea.hbm %s1134_s30, 128  ;;  %s869_s28 = scalar_lea.hbm %s1186_s3, 256 }
 0x3c2   : > { %p866_p2 = scmp.ne.s32.totalorder %s1134_s30, %s865_s10  ;;  %p870_p12 = scmp.lt.s32.totalorder %s1134_s30, %s1186_s3 }
 0x3c3   : > { %p871_p13 = scmp.lt.s32.totalorder %s869_s28, %s865_s10 }
 0x3c4   : > { %p867_p6 = pnand %p866_p2, %p1053_p0 }
 0x3c5   : > { %p872_p11 = por %p871_p13, %p870_p12 }
 0x3c6   : > { %p868_p9 = pneg %p867_p6 }
 0x3c8   : > { %p873_p1 = pnand %p872_p11, %p868_p9 }
 0x3ca   : > { %876 = shalt.err (!%p873_p1)
}
 0x3cb   : > { %688 = dma.vmem_to_hbm [thread:$0]  (%p1053_p0), %s1136_s27, 128, %s1134_s30, %s492_s15   ;;  %v679_v44 = vpop.f32.mrf.mxu1 }
 0x3cc PF: > { %s518_s5 = sand.u32 1, %s919_s12   ;;  %p1197_p4 = scmp.ne.s32.totalorder %s1189_s21, 0 }
 0x3cd   : > { %p1198_p8 = scmp.ge.s32.totalorder %s939_s17, 2  ;;  %s519_s8 = scalar_lea.sflag [#allocation4], %s518_s5 }
 0x3cf   : > { %p702_p10 = pnand %p1198_p8, %p1197_p4 }
 0x3d1   : > { %p703_p5 = pneg %p702_p10 }
 0x3d3   : > { %914 = dma.done.wait (%p703_p5), %s519_s8, 128  }
 0x3d4   : > { %916 = vsyncadd (%p703_p5), %s519_s8, 4294967168  ;;  %s22_s17 = sadd.s32 1, %s939_s17   ;;  %s1199_s12 = smov %s923_s13 }
 0x3d5   : > { %p19_p7 = scmp.ge.s32.totalorder %s22_s17, 4   ;;  %s1200_s13 = smov %s927_s14 }
 0x3d6   : > { %s1201_s14 = smov %s1062_s11  ;;  %s1202_s15 = smov %s935_s16 }
 0x3d7   : > { %s1203_s16 = smov %s1205_s26  ;;  %21 = sbr.rel (!%p19_p7) target bundleno = 10 (0xa), region = 94 }
 0x3dc   :  { %524 = vsyncpa [#allocation3], 1 }
 0x3dd   :  { %526 = vsyncpa [#allocation3 + $0x1], 1 }
 0x3de   :  { %527 = vsyncpa [#allocation6], 1 }
 0x3df   :  { %529 = vsyncpa [#allocation6 + $0x1], 1 }
 0x3e0   :  { %530 = vsyncpa [#allocation4], 1 }
 0x3e1   :  { %532 = vsyncpa [#allocation4 + $0x1], 1 }

</bundles_post_ra>
